<compile_context>
chip_gen: v7x
topology: tpu7x:2x2x1
jax: 0.10.0
libtpu: 0.0.40
codegen_flags: <defaults>
</compile_context>

<pallas_src>
import jax
import jax.numpy as jnp
from jax.experimental import pallas as pl
from jax.experimental.pallas import tpu as pltpu


# --------------------------------------------------------------------------
# Stage 1: fts = seq @ W^T   (f32 compute on MXU, bf16 storage)
# --------------------------------------------------------------------------
def _linear_kernel(seq_ref, wt_ref, fts_ref):
    # seq_ref: (TR, Fin) f32   wt_ref: (Fin, Fout) f32   fts_ref: (TR, Fout) bf16
    fts_ref[...] = jnp.dot(
        seq_ref[...], wt_ref[...],
        preferred_element_type=jnp.float32).astype(fts_ref.dtype)


# --------------------------------------------------------------------------
# Stage 2: out = PReLU(adj @ fts + bias)   (bf16 inputs, f32 accumulation)
# --------------------------------------------------------------------------
def _prop_kernel(alpha_ref, adj_ref, fts_ref, b_ref, out_ref):
    # adj_ref: (TR, N) bf16    fts_ref: (N, Fout) bf16
    # b_ref:   (1, Fout) f32   out_ref: (TR, Fout) f32
    h = jnp.dot(adj_ref[...], fts_ref[...],
                preferred_element_type=jnp.float32)          # MXU, f32 acc
    h = h + b_ref[...]                                       # VPU (bias bcast)
    alpha = alpha_ref[0]                                     # SMEM scalar
    out_ref[...] = jnp.where(h > 0.0, h, alpha * h).astype(out_ref.dtype)


def gcn_forward(seq, adj, weight, bias, alpha, *, row_tile=None,
                matmul_dtype=jnp.bfloat16):
    """seq: (B, N, Fin), adj: (B, N, N), weight: (Fout, Fin), bias: (Fout,),
    alpha: scalar PReLU slope.  Returns (B, N, Fout) in float32."""
    B, N, Fin = seq.shape
    Fout = weight.shape[0]

    # Row tile of adj: single tile for small graphs, 256/128 rows otherwise.
    if row_tile is None:
        if N <= 256:
            row_tile = N
        elif N % 256 == 0:
            row_tile = 256
        elif N % 128 == 0:
            row_tile = 128
        else:
            row_tile = N          # fallback: untiled rows
    assert N % row_tile == 0, "row_tile must divide N"
    n_tiles = N // row_tile

    # Host-side prep (done once):
    wt = weight.astype(jnp.float32).T                 # (Fin, Fout)
    b2 = bias.astype(jnp.float32).reshape(1, Fout)    # (1, Fout)
    alpha1 = jnp.asarray(alpha, jnp.float32).reshape(1)

    # ---- Stage 1: one-shot linear ------------------------------------------
    fts = pl.pallas_call(
        _linear_kernel,
        out_shape=jax.ShapeDtypeStruct((B, N, Fout), matmul_dtype),
        grid_spec=pltpu.PrefetchScalarGridSpec(
            num_scalar_prefetch=0,
            grid=(B, n_tiles),
            in_specs=[
                pl.BlockSpec((pl.Squeezed(), row_tile, Fin),
                             lambda b, r: (b, r, 0)),          # seq row tile
                pl.BlockSpec((Fin, Fout), lambda b, r: (0, 0)),  # W^T resident
            ],
            out_specs=pl.BlockSpec((pl.Squeezed(), row_tile, Fout),
                                   lambda b, r: (b, r, 0)),
        ),
        compiler_params=pltpu.CompilerParams(
            dimension_semantics=("parallel", "parallel")),
    )(seq.astype(jnp.float32), wt)

    # ---- Stage 2: propagation + bias + PReLU -------------------------------
    adj_c = adj.astype(matmul_dtype)
    itemsize = jnp.dtype(matmul_dtype).itemsize

    # VMEM hint: adj tile + resident fts + out tile, double-buffered + margin.
    blk_bytes = (row_tile * N * itemsize
                 + N * Fout * itemsize
                 + row_tile * Fout * 4)
    vmem_limit = int(min(64 * 2**20, max(32 * 2**20, 4 * blk_bytes)))

    cost = pl.CostEstimate(
        flops=2 * B * N * N * Fout,
        transcendentals=0,
        bytes_accessed=(B * N * N * itemsize        # adj
                        + B * N * Fout * itemsize   # fts
                        + B * N * Fout * 4          # out
                        + Fout * 4),                # bias
    )

    out = pl.pallas_call(
        _prop_kernel,
        out_shape=jax.ShapeDtypeStruct((B, N, Fout), jnp.float32),
        grid_spec=pltpu.PrefetchScalarGridSpec(
            num_scalar_prefetch=0,
            grid=(B, n_tiles),
            in_specs=[
                # PReLU alpha as a scalar in SMEM
                pl.BlockSpec(memory_space=pltpu.MemorySpace.SMEM),
                # adj: tile of output rows, full contraction dim
                pl.BlockSpec((pl.Squeezed(), row_tile, N),
                             lambda b, r: (b, r, 0)),
                # fts: constant block index across r -> stays resident in VMEM
                pl.BlockSpec((pl.Squeezed(), N, Fout),
                             lambda b, r: (b, 0, 0)),
                # bias: constant block -> resident
                pl.BlockSpec((1, Fout), lambda b, r: (0, 0)),
            ],
            out_specs=pl.BlockSpec((pl.Squeezed(), row_tile, Fout),
                                   lambda b, r: (b, r, 0)),
        ),
        compiler_params=pltpu.CompilerParams(
            dimension_semantics=("parallel", "parallel"),
            vmem_limit_bytes=vmem_limit),
        cost_estimate=cost,
    )(alpha1, adj_c, fts, b2)

    return out


def _reference(seq, adj, weight, bias, alpha):
    # Mirrors the PyTorch module exactly (full f32).
    fts = jnp.einsum("bnf,of->bno", seq, weight)
    out = jnp.einsum("bnm,bmo->bno", adj, fts) + bias[None, None, :]
    return jnp.where(out > 0, out, alpha * out)


if __name__ == "__main__":
    # Small shapes consistent with the module's forward.
    B, N, IN_FT, OUT_FT = 2, 16, 8, 32

    key = jax.random.PRNGKey(0)
    k_seq, k_adj, k_w = jax.random.split(key, 3)

    seq = jax.random.normal(k_seq, (B, N, IN_FT), dtype=jnp.float32)

    # Symmetric dense adjacency.
    a = jax.random.uniform(k_adj, (B, N, N), dtype=jnp.float32)
    adj = 0.5 * (a + jnp.swapaxes(a, 1, 2))

    # Parameters (deterministic, mirror PyTorch init):
    #   nn.Linear weight: xavier_uniform_, shape (out_ft, in_ft)
    #   bias: zeros(out_ft);  PReLU: single alpha = 0.25
    bound = (6.0 / (IN_FT + OUT_FT)) ** 0.5
    weight = jax.random.uniform(
        k_w, (OUT_FT, IN_FT), dtype=jnp.float32, minval=-bound, maxval=bound)
    bias = jnp.zeros((OUT_FT,), dtype=jnp.float32)
    alpha = 0.25

    out = gcn_forward(seq, adj, weight, bias, alpha)
    out = jax.block_until_ready(out)

    ref = _reference(seq, adj, weight, bias, alpha)
    assert out.shape == (B, N, OUT_FT)
    # bf16 MXU inputs (f32 accumulation) -> tolerance covers bf16 rounding.
    assert jnp.allclose(out, ref, atol=3e-2, rtol=3e-2), "mismatch vs reference"

    print("KERNEL_OK")
</pallas_src>

<mosaic_0001>
module attributes {stable_mosaic.version = 11 : i64} {
  func.func @_linear_kernel(%arg0: i32, %arg1: i32, %arg2: memref<1x16x8xf32, #tpu.memory_space<vmem>>, %arg3: memref<8x32xf32, #tpu.memory_space<vmem>>, %arg4: memref<1x16x32xbf16, #tpu.memory_space<vmem>>) attributes {dimension_semantics = [#tpu.dimension_semantics<parallel>, #tpu.dimension_semantics<parallel>], iteration_bounds = array<i64: 2, 1>, scalar_prefetch = 0 : i64, scratch_operands = 0 : i64, tpu.core_type = #tpu.core_type<tc>, window_params = [{transform_indices = @transform_0, window_bounds = array<i64: 1, 16, 8>}, {pipeline_mode = #tpu.pipeline_mode<synchronous>, transform_indices = @transform_1, window_bounds = array<i64: 8, 32>}, {transform_indices = @transform_2, window_bounds = array<i64: 1, 16, 32>}]} {
    %c0 = arith.constant 0 : index
    %c0_0 = arith.constant 0 : index
    %c0_1 = arith.constant 0 : index
    %0 = vector.load %arg2[%c0, %c0_0, %c0_1] : memref<1x16x8xf32, #tpu.memory_space<vmem>>, vector<1x16x8xf32>
    %1 = vector.shape_cast %0 : vector<1x16x8xf32> to vector<16x8xf32>
    %c0_2 = arith.constant 0 : index
    %c0_3 = arith.constant 0 : index
    %2 = vector.load %arg3[%c0_2, %c0_3] : memref<8x32xf32, #tpu.memory_space<vmem>>, vector<8x32xf32>
    %cst = arith.constant dense<0.000000e+00> : vector<16x32xf32>
    %3 = tpu.matmul %1, %2, %cst {dimension_numbers = #tpu.dot_dimension_numbers<[1], [0], [0], [1], [0, 0, 1, 1], [], []>} : vector<16x8xf32>, vector<8x32xf32>, vector<16x32xf32> -> vector<16x32xf32>
    %4 = arith.truncf %3 : vector<16x32xf32> to vector<16x32xbf16>
    %c0_4 = arith.constant 0 : index
    %c0_5 = arith.constant 0 : index
    %c0_6 = arith.constant 0 : index
    %5 = vector.load %arg4[%c0_4, %c0_5, %c0_6] : memref<1x16x32xbf16, #tpu.memory_space<vmem>>, vector<1x16x32xbf16>
    %6 = vector.shape_cast %5 : vector<1x16x32xbf16> to vector<16x32xbf16>
    %7 = vector.shape_cast %4 : vector<16x32xbf16> to vector<1x16x32xbf16>
    tpu.vector_store %arg4[%c0_4, %c0_5, %c0_6], %7 {strides = array<i32>} : memref<1x16x32xbf16, #tpu.memory_space<vmem>>, vector<1x16x32xbf16>,
    return
  }
  func.func @transform_0(%arg0: i32, %arg1: i32) -> (i32, i32, i32) {
    %c0_i32 = arith.constant 0 : i32
    %c0_i32_0 = arith.constant 0 : i32
    return %arg0, %arg1, %c0_i32 : i32, i32, i32
  }
  func.func @transform_1(%arg0: i32, %arg1: i32) -> (i32, i32) {
    %c0_i32 = arith.constant 0 : i32
    %c0_i32_0 = arith.constant 0 : i32
    %c0_i32_1 = arith.constant 0 : i32
    return %c0_i32, %c0_i32_0 : i32, i32
  }
  func.func @transform_2(%arg0: i32, %arg1: i32) -> (i32, i32, i32) {
    %c0_i32 = arith.constant 0 : i32
    %c0_i32_0 = arith.constant 0 : i32
    return %arg0, %arg1, %c0_i32 : i32, i32, i32
  }
}

</mosaic_0001>

<bundles_post_ra>
// kernel: tpu_custom_call.1
= control target key start
LH: loop header
LB: loop body
LE: loop exit
PB: predicated region body
PF: predicated region fallthrough
CT: control target
= control target key end

     0   :  { %7 = vsyncpa [#allocation3], 0  ;;  %s666_s0 = inlined_call_operand.vmem [shape: f32[2,16,8], index: 0, kind: input, shape index: {}]   ;;  %s667_s1 = inlined_call_operand.vmem [shape: f32[8,32], index: 1, kind: input, shape index: {}]   ;;  %s668_s2 = inlined_call_operand.hbm [shape: bf16[2,16,32], index: 2, kind: output, shape index: {}]  }
   0x1   :  { %9 = vsyncpa [#allocation3 + $0x1], 0  ;;  %s548_s9 = smov 0   ;;  %s550_s10 = smov 0  }
   0x2   :  { %s552_s11 = smov 0   ;;  %s554_s12 = smov 0  }
   0x3   :  { %s556_s13 = smov 0   ;;  %s558_s14 = smov 0  }
   0x4 LB: > { %s364_s15 = sadd.s32 4294967295, %s528_s14   ;;  %s365_s16 = sadd.s32 4294967294, %s528_s14   ;;  %s528_s14 = sphi %s558_s14, %s15_s14   ;;  %s524_s13 = sphi %s556_s13, %s675_s13   ;;  %s520_s12 = sphi %s554_s12, %s674_s12   ;;  %s516_s11 = sphi %s552_s11, %s673_s11   ;;  %s512_s10 = sphi %s550_s10, %s672_s10   ;;  %s508_s9 = sphi %s548_s9, %s671_s9  }
   0x5   : > { %s27_s17 = sadd.s32 1, %s524_s13  ;;  %s85_s18 = sadd.s32 1, %s516_s11 }
   0x6   : > { %p29_p0 = scmp.ge.s32.totalorder %s27_s17, 2  ;;  %p95_p1 = scmp.ne.s32.totalorder %s516_s11, %s512_s10 }
   0x7   : > { %p96_p2 = scmp.eq.s32.totalorder %s364_s15, 1  ;;  %p101_p3 = scmp.ne.s32.totalorder %s512_s10, %s508_s9 }
   0x8   : > { %s677_s17 = smov (%p29_p0, %s27_s17), 0  ;;  %p102_p5 = scmp.eq.s32.totalorder %s365_s16, 1 }
   0x9   : > { %p588_p4 = por %p96_p2, %p95_p1  ;;  %s80_s20 = ssub.s32 %s524_s13, %s677_s17 }
   0xa   : > { %p368_p6 = scmp.ge.s32.totalorder %s528_s14, 1  ;;  %p83_p7 = scmp.eq.s32.totalorder %s80_s20, 0 }
   0xb   : > { %p595_p8 = por %p102_p5, %p101_p3  ;;  %p136_p9 = scmp.lt.s32.totalorder %s528_s14, 3 }
   0xc   : > { %s601_s22 = scalar_select %p83_p7, %s516_s11, %s85_s18  }
   0xd   : > { %p137_p10 = pnand %p368_p6, %p136_p9 }
   0xe   : > { %v175_v0 = vld [vmem:[%s667_s1] sm:$0xff] (!%p137_p10)  ;;  %p163_p11 = scmp.lt.s32.totalorder (!%p137_p10), %s520_s12, 1  ;;  %vm176_vm0 = vcmask (!%p137_p10), 64512   ;;  %s159_s30 = sand.u32 (!%p137_p10), 1, %s512_s10   ;;  %vm266_vm1 = vcmask (!%p137_p10), 257024  }
   0xf   : > { %140 = sbr.rel (%p137_p10) target bundleno = 258 (0x102), region = 28  ;;  %388 = vmatprep.subr.mxu0 (!%p137_p10), %v175_v0  ;;  %s369_s3 = sshll.u32 (!%p137_p10), %s159_s30, 3 }
  0x10   : > { %389 = vmatpush3.msra.mxu0 (!%p137_p10), %v175_v0  ;;  %s161_s4 = scalar_lea.vmem (!%p137_p10), [#allocation2], %s369_s3  ;;  %s384_s6 = sshll.u32 (!%p137_p10), %s520_s12, 7 }
  0x11   : > { %s285_s5 = sshll.u32 (!%p137_p10), %s161_s4, 4  ;;  %s618_s15 = scalar_lea.hbm (!%p137_p10), %s668_s2, %s384_s6  ;;  %s613_s5 = int_to_ptr.vmem [resolvable:$true] %s285_s5 }
  0x12   : > { %s620_s16 = scalar_lea.sflag (!%p137_p10), [#allocation3], %s159_s30  ;;  %s530_s18 = smov (!%p137_p10), [#allocation2]  }
  0x13   : > { %s454_s20 = sshll.u32 (!%p137_p10), %s530_s18, 4  ;;  %s455_s20 = int_to_ptr.vmem [resolvable:$false] %s454_s20 }
  0x14   : > { %s456_s23 = scalar_lea.vmem (!%p137_p10), %s455_s20, 256  ;;  %p457_p1 = scmp.lt.s32.totalorder (!%p137_p10), %s613_s5, %s455_s20 }
  0x16   : > { %s164_s25 = scalar_select %p163_p11, %s520_s12, 1 }
  0x17   : > { %s450_s12 = scalar_lea.vmem %s613_s5, 128 }
  0x18   : > { %s381_s26 = sshll.u32 %s164_s25, 4  ;;  %p451_p12 = scmp.ne.s32.totalorder %s613_s5, %s450_s12 }
  0x19   : > { %s170_s29 = scalar_lea.vmem %s666_s0, %s381_s26  ;;  %p458_p2 = scmp.lt.s32.totalorder %s456_s23, %s450_s12 }
  0x1a   : > { %v173_v1 = vld [vmem:[%s170_s29] sm:$0xff]  ;;  %v174_v2 = vld [vmem:[%s170_s29 + $0x8] sm:$0xff]  ;;  %p452_p13 = pnand %p451_p12, %p588_p4 }
  0x1b   : > { %390 = vmatprep.mubr.msk.f32.mxu0 %vm176_vm0, %v173_v1  ;;  %p459_p3 = por %p458_p2, %p457_p1 }
  0x1c   : > { %391 = vmatmul.mubr.msk.f32.vlgmr.msra.gmra.mrb[0].mxu0 %vm176_vm0, %v174_v2  ;;  %p453_p0 = pneg %p452_p13 }
  0x1e   : > { %p460_p5 = pnand %p459_p3, %p453_p0 }
  0xef   : > { %v392_v3 = vpop.f32.mrb[0].mxu0 }
  0xf0   : > { %v383_v4 = vpack.c.bf16 %v392_v3, %v392_v3  ;;  %v249_v5 = vpop.f32.mrb[1].mxu0 }
  0xf1   : > { %v382_v6 = vpack.c.bf16 %v249_v5, %v249_v5 }
  0xf2   : > { %268 = vst.msk [vmem:[%s161_s4 + $0x4] sm:$0xf] %vm266_vm1, %v383_v4 }
  0xf3   : > { %267 = vst.msk [vmem:[%s161_s4] sm:$0xf] %vm266_vm1, %v382_v6 }
  0xf4   : > { %463 = shalt.err (!%p460_p5)
}
  0xf5   : > { %s464_s24 = scalar_lea.hbm %s618_s15, 128  ;;  %s468_s27 = scalar_lea.hbm %s668_s2, 256 }
  0xf6   : > { %p465_p6 = scmp.ne.s32.totalorder %s618_s15, %s464_s24  ;;  %p469_p10 = scmp.lt.u32.totalorder %s618_s15, %s668_s2 }
  0xf7   : > { %p470_p11 = scmp.lt.u32.totalorder %s468_s27, %s464_s24  ;;  %p472_p13 = scmp.lt.u32.totalorder %s464_s24, %s618_s15 }
  0xf8   : > { %p466_p7 = pnand %p465_p6, %p588_p4 }
  0xf9   : > { %p471_p12 = por %p470_p11, %p469_p10 }
  0xfa   : > { %p467_p9 = pneg %p466_p7 }
  0xfb   : > { %p473_p0 = por %p472_p13, %p471_p12 }
  0xfd   : > { %p474_p1 = pnand %p473_p0, %p467_p9 }
  0xff   : > { %477 = shalt.err (!%p474_p1)
}
 0x100   : > { %s531_s30 = smov 64   ;;  %s532_s3 = smov 4  }
 0x101   : > { %393 = dma.vmem_to_hbm [thread:$0]  (%p588_p4), %s613_s5, 128, %s618_s15, %s620_s16, %s531_s30, %s531_s30, %s532_s3  }
 0x102 PF: > { %p399_p2 = scmp.ge.s32.totalorder %s528_s14, 2  ;;  %s300_s4 = sand.u32 1, %s508_s9  }
 0x103   : > { %s301_s6 = scalar_lea.sflag [#allocation3], %s300_s4 }
 0x104   : > { %p396_p3 = pnand %p399_p2, %p595_p8 }
 0x106   : > { %503 = dma.done.wait (!%p396_p3), %s301_s6, 128  }
 0x107   : > { %505 = vsyncadd (!%p396_p3), %s301_s6, 4294967168  ;;  %s15_s14 = sadd.s32 1, %s528_s14   ;;  %s671_s9 = smov %s512_s10 }
 0x108   : > { %p12_p5 = scmp.ge.s32.totalorder %s15_s14, 4   ;;  %s672_s10 = smov %s516_s11 }
 0x109   : > { %s673_s11 = smov %s601_s22  ;;  %s674_s12 = smov %s524_s13 }
 0x10a   : > { %s675_s13 = smov %s677_s17  ;;  %14 = sbr.rel (!%p12_p5) target bundleno = 4 (0x4), region = 63 }
 0x111   :  { %306 = vsyncpa [#allocation3], 1 }
 0x112   :  { %308 = vsyncpa [#allocation3 + $0x1], 1 }

</bundles_post_ra>
